<compile_context>
chip_gen: v7x
topology: tpu7x:2x2x1
jax: 0.10.0
libtpu: 0.0.40
codegen_flags: <defaults>
</compile_context>

<pallas_src>
import functools

import jax
import jax.numpy as jnp
from jax import lax
from jax.experimental import pallas as pl
from jax.experimental.pallas import tpu as pltpu

# config values (the original module reads these from a `config` dict)
LOWER = -5.0
UPPER = 5.0


def _round_up(a, b):
    return (a + b - 1) // b * b


def _round_down(a, b):
    return (a // b) * b


def _sphere_kernel_1d(x_ref, xopt_ref, coef_ref, o_ref):
    """Full-width D in one block: direct reduce + store, no scratch."""
    d = x_ref[...].astype(jnp.float32) - xopt_ref[...].astype(jnp.float32)
    prod = d * d * coef_ref[...].astype(jnp.float32)
    tb, td = prod.shape
    if td % 128 == 0 and td > 128:
        # Lane-dense partial reduce on the VPU; single 128->1 XLU reduce after.
        prod = jnp.sum(prod.reshape(tb, td // 128, 128), axis=1)
    o_ref[...] = jnp.sum(prod, axis=1, keepdims=True).astype(o_ref.dtype)


def _sphere_kernel_2d(x_ref, xopt_ref, coef_ref, o_ref, acc_ref, *, dim, td):
    """Wide-D path: D tiled on grid axis 1, lane-dense (TB,128) accumulator."""
    k = pl.program_id(1)

    @pl.when(k == 0)
    def _():
        acc_ref[...] = jnp.zeros_like(acc_ref)

    d = x_ref[...].astype(jnp.float32) - xopt_ref[...].astype(jnp.float32)
    prod = d * d * coef_ref[...].astype(jnp.float32)
    tb = prod.shape[0]

    if dim % td != 0:
        # Ragged last k-block: columns beyond the real D are undefined and
        # MUST be masked before they enter the row sums.
        col = lax.broadcasted_iota(jnp.int32, (tb, td), 1) + k * td
        prod = jnp.where(col < dim, prod, 0.0)

    # VPU adds keep the lane axis dense; no per-block XLU reduce, no width-1
    # masked accumulator stores.
    acc_ref[...] += jnp.sum(prod.reshape(tb, td // 128, 128), axis=1)

    @pl.when(k == pl.num_programs(1) - 1)
    def _():
        o_ref[...] = jnp.sum(acc_ref[...], axis=1, keepdims=True).astype(o_ref.dtype)


def sphere_forward(
    x,
    x_opt,
    coefs1,
    *,
    target_tile_bytes=2 * 1024 * 1024,        # ~2 MiB per input stream per tile
    vmem_tile_budget_bytes=16 * 1024 * 1024,  # 3 streams x 2 pipeline buffers
    vmem_limit_bytes=40 * 1024 * 1024,
):
    """Pallas implementation of Sphere.forward.

    x, x_opt, coefs1: (B, D) float32
    returns: (B, 1) float32
    """
    B, D = x.shape
    dtype = x.dtype
    itemsize = jnp.dtype(dtype).itemsize

    # Rows that fit in the VMEM tile budget (3 inputs x 2 pipeline buffers).
    rows_budget = vmem_tile_budget_bytes // max(6 * D * itemsize, 1)

    if rows_budget >= 8:
        # Common case: full D in one block, 1-D grid over batch only.
        TB = max(target_tile_bytes // max(D * itemsize, 1), 8)
        TB = _round_down(min(TB, rows_budget), 8)
        TB = max(min(TB, _round_up(B, 8)), 8)
        grid = (pl.cdiv(B, TB),)

        in_spec = pl.BlockSpec((TB, D), lambda i: (i, 0))
        out_spec = pl.BlockSpec((TB, 1), lambda i: (i, 0))

        kernel = _sphere_kernel_1d
        scratch_shapes = []
        dim_semantics = ("parallel",)
    else:
        # Very wide D: add a reduction grid axis over D (last, "arbitrary").
        TB = 8
        lanes_budget = vmem_tile_budget_bytes // (6 * TB * itemsize)
        TD = max(_round_down(lanes_budget, 128), 128)
        TD = min(TD, _round_up(D, 128))
        grid = (pl.cdiv(B, TB), pl.cdiv(D, TD))

        in_spec = pl.BlockSpec((TB, TD), lambda i, k: (i, k))
        out_spec = pl.BlockSpec((TB, 1), lambda i, k: (i, 0))

        kernel = functools.partial(_sphere_kernel_2d, dim=D, td=TD)
        scratch_shapes = [pltpu.VMEM((TB, 128), jnp.float32)]
        dim_semantics = ("parallel", "arbitrary")

    out = pl.pallas_call(
        kernel,
        out_shape=jax.ShapeDtypeStruct((B, 1), dtype),
        grid_spec=pltpu.PrefetchScalarGridSpec(
            num_scalar_prefetch=0,
            grid=grid,
            in_specs=[in_spec, in_spec, in_spec],
            out_specs=out_spec,
            scratch_shapes=scratch_shapes,
        ),
        compiler_params=pltpu.CompilerParams(
            dimension_semantics=dim_semantics,
            vmem_limit_bytes=vmem_limit_bytes,
        ),
        cost_estimate=pl.CostEstimate(
            flops=4 * B * D,                  # sub, 2 muls, reduce add
            transcendentals=0,
            bytes_accessed=3 * B * D * itemsize + B * itemsize,
        ),
    )(x, x_opt, coefs1)

    return out


def generate_params(key, batch_size, dimension):
    """Deterministic stand-in for Sphere.generate()'s parameter creation."""
    k1, k2 = jax.random.split(key)
    x_opt = (
        jax.random.uniform(k1, (batch_size, dimension), dtype=jnp.float32)
        * (UPPER - LOWER)
        + LOWER
    )
    coefs1 = (
        jax.random.uniform(k2, (batch_size, dimension), dtype=jnp.float32) * 10.0
    )
    return x_opt, coefs1


if __name__ == "__main__":
    batch, dim = 8, 32

    key = jax.random.PRNGKey(0)
    kx, kp = jax.random.split(key)

    x_opt, coefs1 = generate_params(kp, batch, dim)
    x = (
        jax.random.uniform(kx, (batch, dim), dtype=jnp.float32)
        * (UPPER - LOWER)
        + LOWER
    )

    out = sphere_forward(x, x_opt, coefs1)
    out = jax.block_until_ready(out)

    # reference check in plain JAX
    ref = jnp.sum(((x - x_opt) ** 2) * coefs1, axis=1, keepdims=True)
    assert out.shape == (batch, 1)
    assert jnp.allclose(out, ref, rtol=1e-5, atol=1e-5)

    print("KERNEL_OK")
</pallas_src>

<mosaic_0001>
module attributes {stable_mosaic.version = 11 : i64} {
  func.func @_sphere_kernel_1d(%arg0: i32, %arg1: memref<8x32xf32, #tpu.memory_space<vmem>>, %arg2: memref<8x32xf32, #tpu.memory_space<vmem>>, %arg3: memref<8x32xf32, #tpu.memory_space<vmem>>, %arg4: memref<8x1xf32, #tpu.memory_space<vmem>>) attributes {dimension_semantics = [#tpu.dimension_semantics<parallel>], iteration_bounds = array<i64: 1>, scalar_prefetch = 0 : i64, scratch_operands = 0 : i64, tpu.core_type = #tpu.core_type<tc>, window_params = [{transform_indices = @transform_0, window_bounds = array<i64: 8, 32>}, {transform_indices = @transform_1, window_bounds = array<i64: 8, 32>}, {transform_indices = @transform_2, window_bounds = array<i64: 8, 32>}, {transform_indices = @transform_3, window_bounds = array<i64: 8, 1>}]} {
    %c0 = arith.constant 0 : index
    %c0_0 = arith.constant 0 : index
    %0 = vector.load %arg1[%c0, %c0_0] : memref<8x32xf32, #tpu.memory_space<vmem>>, vector<8x32xf32>
    %c0_1 = arith.constant 0 : index
    %c0_2 = arith.constant 0 : index
    %1 = vector.load %arg2[%c0_1, %c0_2] : memref<8x32xf32, #tpu.memory_space<vmem>>, vector<8x32xf32>
    %2 = arith.subf %0, %1 : vector<8x32xf32>
    %3 = arith.mulf %2, %2 : vector<8x32xf32>
    %c0_3 = arith.constant 0 : index
    %c0_4 = arith.constant 0 : index
    %4 = vector.load %arg3[%c0_3, %c0_4] : memref<8x32xf32, #tpu.memory_space<vmem>>, vector<8x32xf32>
    %5 = arith.mulf %3, %4 : vector<8x32xf32>
    %cst = arith.constant dense<0.000000e+00> : vector<8xf32>
    %6 = vector.multi_reduction <add>, %5, %cst [1] : vector<8x32xf32> to vector<8xf32>
    %7 = vector.shape_cast %6 : vector<8xf32> to vector<8x1xf32>
    %c0_5 = arith.constant 0 : index
    %c0_6 = arith.constant 0 : index
    %8 = vector.load %arg4[%c0_5, %c0_6] : memref<8x1xf32, #tpu.memory_space<vmem>>, vector<8x1xf32>
    tpu.vector_store %arg4[%c0_5, %c0_6], %7 {strides = array<i32>} : memref<8x1xf32, #tpu.memory_space<vmem>>, vector<8x1xf32>,
    return
  }
  func.func @transform_0(%arg0: i32) -> (i32, i32) {
    %c0_i32 = arith.constant 0 : i32
    %c0_i32_0 = arith.constant 0 : i32
    return %arg0, %c0_i32 : i32, i32
  }
  func.func @transform_1(%arg0: i32) -> (i32, i32) {
    %c0_i32 = arith.constant 0 : i32
    %c0_i32_0 = arith.constant 0 : i32
    return %arg0, %c0_i32 : i32, i32
  }
  func.func @transform_2(%arg0: i32) -> (i32, i32) {
    %c0_i32 = arith.constant 0 : i32
    %c0_i32_0 = arith.constant 0 : i32
    return %arg0, %c0_i32 : i32, i32
  }
  func.func @transform_3(%arg0: i32) -> (i32, i32) {
    %c0_i32 = arith.constant 0 : i32
    %c0_i32_0 = arith.constant 0 : i32
    return %arg0, %c0_i32 : i32, i32
  }
}

</mosaic_0001>

<bundles_post_ra>
// kernel: tpu_custom_call.1
= control target key start
LH: loop header
LB: loop body
LE: loop exit
PB: predicated region body
PF: predicated region fallthrough
CT: control target
= control target key end

     0   :  { %8 = vsyncpa [#allocation3], 0  ;;  %s202_s0 = inlined_call_operand.hbm [shape: f32[8,32], index: 0, kind: input, shape index: {}]   ;;  %s203_s1 = inlined_call_operand.hbm [shape: f32[8,32], index: 1, kind: input, shape index: {}]   ;;  %s204_s2 = inlined_call_operand.hbm [shape: f32[8,32], index: 2, kind: input, shape index: {}]   ;;  %s205_s3 = inlined_call_operand.vmem [shape: f32[8,1], index: 3, kind: output, shape index: {}]  }
   0x1   :  { %9 = vsyncpa [#allocation5], 0  ;;  %s140_s12 = smov [#allocation4]   ;;  %s141_s14 = smov [#allocation2]  }
   0x2   :  { %s26_s13 = sshll.u32 %s140_s12, 4  ;;  %s16_s15 = sshll.u32 %s141_s14, 4  ;;  %s27_s13 = int_to_ptr.vmem [resolvable:$true] %s26_s13  ;;  %s17_s15 = int_to_ptr.vmem [resolvable:$true] %s16_s15 }
   0x3   :  { %s70_s18 = scalar_lea.hbm %s203_s1, 128 }
   0x4   :  { %p71_p0 = scmp.ne.s32.totalorder %s203_s1, %s70_s18  ;;  %p74_p1 = scmp.lt.u32.totalorder %s70_s18, %s203_s1 }
   0x6   :  { %p76_p2 = pnand %p74_p1, %p71_p0 }
   0x8   :  { %79 = shalt.err (!%p76_p2)
}
   0x9   :  { %s80_s23 = scalar_lea.vmem %s27_s13, 128  ;;  %p85_p4 = scmp.lt.s32.totalorder %s27_s13, %s27_s13 }
   0xa   :  { %p81_p3 = scmp.ne.s32.totalorder %s27_s13, %s80_s23  ;;  %p86_p5 = scmp.lt.s32.totalorder %s80_s23, %s80_s23 }
   0xc   :  { %p87_p6 = por %p86_p5, %p85_p4 }
   0xe   :  { %p88_p7 = pnand %p87_p6, %p81_p3 }
  0x10   :  { %91 = shalt.err (!%p88_p7)
}
  0x11   :  { %29 = dma.hbm_to_vmem [thread:$0]  %s203_s1, 128, %s27_s13, [#allocation5]  }
  0x12   :  { %s92_s28 = scalar_lea.hbm %s202_s0, 128 }
  0x13   :  { %p93_p8 = scmp.ne.s32.totalorder %s202_s0, %s92_s28  ;;  %p96_p9 = scmp.lt.u32.totalorder %s92_s28, %s202_s0 }
  0x15   :  { %p98_p10 = pnand %p96_p9, %p93_p8 }
  0x17   :  { %101 = shalt.err (!%p98_p10)
}
  0x18   :  { %s102_s6 = scalar_lea.vmem %s17_s15, 128  ;;  %p107_p12 = scmp.lt.s32.totalorder %s17_s15, %s17_s15 }
  0x19   :  { %p103_p11 = scmp.ne.s32.totalorder %s17_s15, %s102_s6  ;;  %p108_p13 = scmp.lt.s32.totalorder %s102_s6, %s102_s6 }
  0x1b   :  { %p109_p0 = por %p108_p13, %p107_p12 }
  0x1d   :  { %p110_p1 = pnand %p109_p0, %p103_p11 }
  0x1f   :  { %113 = shalt.err (!%p110_p1)
}
  0x20   :  { %19 = dma.hbm_to_vmem [thread:$0]  %s202_s0, 128, %s17_s15, [#allocation3]  }
  0x21   :  { %s142_s8 = smov [#allocation6]   ;;  %s114_s12 = scalar_lea.hbm %s204_s2, 128 }
  0x22   :  { %s36_s9 = sshll.u32 %s142_s8, 4  ;;  %p115_p2 = scmp.ne.s32.totalorder %s204_s2, %s114_s12  ;;  %s37_s9 = int_to_ptr.vmem [resolvable:$true] %s36_s9 }
  0x23   :  { %p118_p3 = scmp.lt.u32.totalorder %s114_s12, %s204_s2 }
  0x25   :  { %p120_p4 = pnand %p118_p3, %p115_p2 }
  0x27   :  { %123 = shalt.err (!%p120_p4)
}
  0x28   :  { %s124_s18 = scalar_lea.vmem %s37_s9, 128  ;;  %p129_p6 = scmp.lt.s32.totalorder %s37_s9, %s37_s9 }
  0x29   :  { %p125_p5 = scmp.ne.s32.totalorder %s37_s9, %s124_s18  ;;  %p130_p7 = scmp.lt.s32.totalorder %s124_s18, %s124_s18 }
  0x2b   :  { %p131_p8 = por %p130_p7, %p129_p6 }
  0x2d   :  { %p132_p9 = pnand %p131_p8, %p125_p5 }
  0x2f   :  { %135 = shalt.err (!%p132_p9)
}
  0x30   :  { %39 = dma.hbm_to_vmem [thread:$0]  %s204_s2, 128, %s37_s9, [#allocation5]  }
  0x31   :  { %136 = dma.done.wait [#allocation3], 128  }
  0x32   :  { %137 = vsyncadd [#allocation3], 4294967168 }
  0x33   :  { %138 = dma.done.wait [#allocation5], 256  }
  0x34   :  { %139 = vsyncadd [#allocation5], 4294967040  ;;  %v49_v0 = vld [vmem:[#allocation2] sm:$0xff]  ;;  %v50_v1 = vld [vmem:[#allocation4] sm:$0xff]  ;;  %vm55_vm0 = vcmask 261120   ;;  %vm59_vm1 = vcmask 7168  }
  0x35   :  { %v51_v2 = vsub.f32 %v49_v0, %v50_v1  ;;  %v53_v3 = vld [vmem:[#allocation6] sm:$0xff] }
  0x37   :  { %v52_v4 = vmul.f32 %v51_v2, %v51_v2 }
  0x39   :  { %v54_v5 = vmul.f32 %v53_v3, %v52_v4 }
  0x3b   :  { %v56_v6 = vsel %vm55_vm0, %v54_v5, 0.0 }
  0x3c   :  { %57 = vadd.xlane.f32.xlu0 %v56_v6 }
  0xc9   :  { %v58_v7 = vpop.xlane.xlu0 %57 }
  0xca   :  { %60 = vst.msk [vmem:[%s205_s3] sm:$0xff] %vm59_vm1, %v58_v7 }
  0xcb   :  { %65 = vsyncpa [#allocation3], 1 }
  0xcc   :  { %66 = vsyncpa [#allocation5], 1 }

</bundles_post_ra>
